<compile_context>
chip_gen: v7x
topology: tpu7x:2x2x1
jax: 0.10.0
libtpu: 0.0.40
codegen_flags: <defaults>
</compile_context>

<pallas_src>
import jax
import jax.numpy as jnp
from jax.experimental import pallas as pl
from jax.experimental.pallas import tpu as pltpu


def _round_up(x, m):
    return ((x + m - 1) // m) * m


def _cdiv(a, b):
    return (a + b - 1) // b


def _make_fuse_kernel(height):
    """out[r, s] = sum_h att[h, r, 0] * x_h[r, s]  — pure vld/vmul/vadd/vst."""

    def kernel(att_ref, *refs):
        # att_ref : [height, TILE_R, 1] f32   (sublane-major per-row scales)
        # refs    : height x [TILE_R, TILE_HW] input tiles, then the output tile
        x_refs = refs[:height]
        o_ref = refs[height]
        # Statically unrolled; accumulate in f32 (mandatory on v5e, safe on all).
        acc = att_ref[0] * x_refs[0][...].astype(jnp.float32)
        for h in range(1, height):
            acc = acc + att_ref[h] * x_refs[h][...].astype(jnp.float32)
        o_ref[...] = acc.astype(o_ref.dtype)

    return kernel


def _tile_budget():
    """Generation-aware (elements per block, scoped-VMEM limit)."""
    try:
        cap = pltpu.get_tpu_info().vmem_capacity_bytes
    except Exception:
        cap = 64 * 1024 * 1024  # assume the smallest (v7x-like) part
    if cap >= 100 * 1024 * 1024:
        # v5e / v6e: 128 MiB VMEM -> ~4 MiB f32 blocks, 64 MiB scoped limit.
        return 1024 * 1024, 64 * 1024 * 1024
    # v7x: 64 MiB VMEM -> ~2 MiB f32 blocks; 2*(height+1) buffers + temps < 32 MiB.
    return 512 * 1024, 32 * 1024 * 1024


def _choose_tiles(rows, hw, target_elems):
    """Pick (tile_rows, tile_hw, grid) obeying the (8,128)-or-full-dim rule."""
    # Lane axis: as large as possible (full extent is always layout-legal).
    if hw <= max(128, target_elems // 8):
        tile_hw = hw
    else:
        tile_hw = max(128, ((target_elems // 8) // 128) * 128)
    n_hw = _cdiv(hw, tile_hw)

    # Sublane/row axis: fill the remaining per-block budget.
    max_rows = max(8, target_elems // tile_hw)
    if rows <= max_rows:
        tile_rows = rows
    else:
        tile_rows = max(8, (max_rows // 8) * 8)
    n_rows = _cdiv(rows, tile_rows)

    # Give the two v7x TensorCores something to split when one block covers all.
    if n_rows * n_hw == 1:
        if hw >= 256:
            tile_hw = _round_up(_cdiv(hw, 2), 128)
            n_hw = _cdiv(hw, tile_hw)
        elif rows >= 16:
            tile_rows = _round_up(_cdiv(rows, 2), 8)
            n_rows = _cdiv(rows, tile_rows)

    return tile_rows, tile_hw, (n_rows, n_hw)


def skff_forward(inp_feats, w1, alpha, w2):
    """inp_feats: list of `height` NCHW arrays [B, C, H, W].

    w1    : [d, C]          conv_du 1x1 weight (Conv2d(C -> d), no bias)
    alpha : scalar          PReLU slope (single shared parameter)
    w2    : [height, C, d]  per-branch 1x1 weights (Conv2d(d -> C), no bias)
    """
    height = len(inp_feats)
    B, C, H, W = inp_feats[0].shape
    HW = H * W
    rows = B * C
    dtype = inp_feats[0].dtype

    # ---- tiny attention path (a few KB of work) in plain JAX ----------------
    # Pooled stats in f32 (precision for bf16 inputs / large H*W).
    s = sum(jnp.mean(f, axis=(2, 3), dtype=jnp.float32) for f in inp_feats)  # [B, C]
    z = s @ w1.T.astype(jnp.float32)                                 # [B, d]
    z = jnp.where(z >= 0.0, z, alpha.astype(jnp.float32) * z)        # PReLU
    att = jnp.einsum('hcd,bd->bhc', w2.astype(jnp.float32), z)       # [B, height, C]
    att = jax.nn.softmax(att, axis=1)                                # softmax over branches
    # Pre-shape for in-kernel sublane broadcast: [height, B*C, 1] (no XLU relayout).
    att = jnp.transpose(att, (1, 0, 2)).reshape(height, rows, 1)

    # ---- heavy, HBM-bound weighted-sum fusion in Pallas ---------------------
    xs = [f.reshape(rows, HW) for f in inp_feats]    # contiguous, copy-free views

    target_elems, vmem_limit = _tile_budget()
    tile_rows, tile_hw, grid = _choose_tiles(rows, HW, target_elems)

    x_spec = pl.BlockSpec((tile_rows, tile_hw), lambda i, j: (i, j))
    att_spec = pl.BlockSpec((height, tile_rows, 1), lambda i, j: (0, i, 0))
    out_spec = pl.BlockSpec((tile_rows, tile_hw), lambda i, j: (i, j))

    out = pl.pallas_call(
        _make_fuse_kernel(height),
        out_shape=jax.ShapeDtypeStruct((rows, HW), dtype),
        grid_spec=pltpu.PrefetchScalarGridSpec(
            num_scalar_prefetch=0,
            grid=grid,
            in_specs=[att_spec] + [x_spec] * height,
            out_specs=out_spec,
        ),
        compiler_params=pltpu.CompilerParams(
            dimension_semantics=("parallel", "parallel"),
            vmem_limit_bytes=vmem_limit,
        ),
    )(att, *xs)

    return out.reshape(B, C, H, W)


def skff_ref(inp_feats, w1, alpha, w2):
    """Plain-JAX reference matching the PyTorch SKFF forward exactly."""
    x = jnp.stack(inp_feats, axis=1)                     # [B, height, C, H, W]
    u = jnp.sum(x, axis=1)                               # [B, C, H, W]
    s = jnp.mean(u, axis=(2, 3))                         # [B, C]
    z = s @ w1.T                                         # [B, d]
    z = jnp.where(z >= 0.0, z, alpha * z)                # PReLU
    att = jnp.einsum('hcd,bd->bhc', w2, z)               # [B, height, C]
    att = jax.nn.softmax(att, axis=1)
    return jnp.sum(x * att[:, :, :, None, None], axis=1)


if __name__ == "__main__":
    # Module config (small, consistent with SKFF defaults)
    B, C, H, W = 2, 8, 16, 16
    height = 3
    reduction = 8
    d = max(int(C / reduction), 4)                       # = 4

    key = jax.random.PRNGKey(0)
    k_in, k_w1, k_w2 = jax.random.split(key, 3)

    # `height` input feature maps, each NCHW
    ks = jax.random.split(k_in, height)
    inp_feats = [jax.random.normal(ks[i], (B, C, H, W), dtype=jnp.float32)
                 for i in range(height)]

    # Deterministic synthetic parameters
    w1 = 0.1 * jax.random.normal(k_w1, (d, C), dtype=jnp.float32)          # conv_du weight
    alpha = jnp.float32(0.25)                                              # PReLU default slope
    w2 = 0.1 * jax.random.normal(k_w2, (height, C, d), dtype=jnp.float32)  # fcs weights

    out = jax.block_until_ready(skff_forward(inp_feats, w1, alpha, w2))

    ref = skff_ref(inp_feats, w1, alpha, w2)
    assert out.shape == (B, C, H, W)
    assert jnp.allclose(out, ref, atol=1e-5, rtol=1e-5), "mismatch vs reference"

    print("KERNEL_OK")
</pallas_src>

<mosaic_0001>
module attributes {stable_mosaic.version = 11 : i64} {
  func.func @kernel(%arg0: i32, %arg1: i32, %arg2: memref<3x16x1xf32, #tpu.memory_space<vmem>>, %arg3: memref<16x128xf32, #tpu.memory_space<vmem>>, %arg4: memref<16x128xf32, #tpu.memory_space<vmem>>, %arg5: memref<16x128xf32, #tpu.memory_space<vmem>>, %arg6: memref<16x128xf32, #tpu.memory_space<vmem>>) attributes {dimension_semantics = [#tpu.dimension_semantics<parallel>, #tpu.dimension_semantics<parallel>], iteration_bounds = array<i64: 1, 2>, scalar_prefetch = 0 : i64, scratch_operands = 0 : i64, tpu.core_type = #tpu.core_type<tc>, window_params = [{transform_indices = @transform_0, window_bounds = array<i64: 3, 16, 1>}, {transform_indices = @transform_1, window_bounds = array<i64: 16, 128>}, {transform_indices = @transform_2, window_bounds = array<i64: 16, 128>}, {transform_indices = @transform_3, window_bounds = array<i64: 16, 128>}, {transform_indices = @transform_4, window_bounds = array<i64: 16, 128>}]} {
    %c0 = arith.constant 0 : index
    %c0_0 = arith.constant 0 : index
    %c0_1 = arith.constant 0 : index
    %0 = vector.load %arg2[%c0, %c0_0, %c0_1] : memref<3x16x1xf32, #tpu.memory_space<vmem>>, vector<1x16x1xf32>
    %1 = vector.shape_cast %0 : vector<1x16x1xf32> to vector<16x1xf32>
    %c0_2 = arith.constant 0 : index
    %c0_3 = arith.constant 0 : index
    %2 = vector.load %arg3[%c0_2, %c0_3] : memref<16x128xf32, #tpu.memory_space<vmem>>, vector<16x128xf32>
    %3 = vector.broadcast %1 : vector<16x1xf32> to vector<16x128xf32>
    %4 = arith.mulf %3, %2 : vector<16x128xf32>
    %c1 = arith.constant 1 : index
    %c0_4 = arith.constant 0 : index
    %c0_5 = arith.constant 0 : index
    %5 = vector.load %arg2[%c1, %c0_4, %c0_5] : memref<3x16x1xf32, #tpu.memory_space<vmem>>, vector<1x16x1xf32>
    %6 = vector.shape_cast %5 : vector<1x16x1xf32> to vector<16x1xf32>
    %c0_6 = arith.constant 0 : index
    %c0_7 = arith.constant 0 : index
    %7 = vector.load %arg4[%c0_6, %c0_7] : memref<16x128xf32, #tpu.memory_space<vmem>>, vector<16x128xf32>
    %8 = vector.broadcast %6 : vector<16x1xf32> to vector<16x128xf32>
    %9 = arith.mulf %8, %7 : vector<16x128xf32>
    %10 = arith.addf %4, %9 : vector<16x128xf32>
    %c2 = arith.constant 2 : index
    %c0_8 = arith.constant 0 : index
    %c0_9 = arith.constant 0 : index
    %11 = vector.load %arg2[%c2, %c0_8, %c0_9] : memref<3x16x1xf32, #tpu.memory_space<vmem>>, vector<1x16x1xf32>
    %12 = vector.shape_cast %11 : vector<1x16x1xf32> to vector<16x1xf32>
    %c0_10 = arith.constant 0 : index
    %c0_11 = arith.constant 0 : index
    %13 = vector.load %arg5[%c0_10, %c0_11] : memref<16x128xf32, #tpu.memory_space<vmem>>, vector<16x128xf32>
    %14 = vector.broadcast %12 : vector<16x1xf32> to vector<16x128xf32>
    %15 = arith.mulf %14, %13 : vector<16x128xf32>
    %16 = arith.addf %10, %15 : vector<16x128xf32>
    %c0_12 = arith.constant 0 : index
    %c0_13 = arith.constant 0 : index
    %17 = vector.load %arg6[%c0_12, %c0_13] : memref<16x128xf32, #tpu.memory_space<vmem>>, vector<16x128xf32>
    tpu.vector_store %arg6[%c0_12, %c0_13], %16 {strides = array<i32>} : memref<16x128xf32, #tpu.memory_space<vmem>>, vector<16x128xf32>,
    return
  }
  func.func @transform_0(%arg0: i32, %arg1: i32) -> (i32, i32, i32) {
    %c0_i32 = arith.constant 0 : i32
    %c0_i32_0 = arith.constant 0 : i32
    %c0_i32_1 = arith.constant 0 : i32
    return %c0_i32, %arg0, %c0_i32_0 : i32, i32, i32
  }
  func.func @transform_1(%arg0: i32, %arg1: i32) -> (i32, i32) {
    %c0_i32 = arith.constant 0 : i32
    return %arg0, %arg1 : i32, i32
  }
  func.func @transform_2(%arg0: i32, %arg1: i32) -> (i32, i32) {
    %c0_i32 = arith.constant 0 : i32
    return %arg0, %arg1 : i32, i32
  }
  func.func @transform_3(%arg0: i32, %arg1: i32) -> (i32, i32) {
    %c0_i32 = arith.constant 0 : i32
    return %arg0, %arg1 : i32, i32
  }
  func.func @transform_4(%arg0: i32, %arg1: i32) -> (i32, i32) {
    %c0_i32 = arith.constant 0 : i32
    return %arg0, %arg1 : i32, i32
  }
}

</mosaic_0001>

<bundles_post_ra>
// kernel: tpu_custom_call.1
= control target key start
LH: loop header
LB: loop body
LE: loop exit
PB: predicated region body
PF: predicated region fallthrough
CT: control target
= control target key end

     0   :  { %s1107_s0 = inlined_call_operand.vmem [shape: f32[3,16,1], index: 0, kind: input, shape index: {}]   ;;  %s1108_s1 = inlined_call_operand.vmem [shape: f32[16,256], index: 1, kind: input, shape index: {}]   ;;  %s1109_s2 = inlined_call_operand.hbm [shape: f32[16,256], index: 2, kind: input, shape index: {}]   ;;  %s1110_s3 = inlined_call_operand.hbm [shape: f32[16,256], index: 3, kind: input, shape index: {}]   ;;  %s1111_s4 = inlined_call_operand.hbm [shape: f32[16,256], index: 4, kind: output, shape index: {}]  }
   0x1   :  { %1114 = sst [smem:[#allocation12_spill]] %s1108_s1 }
   0x2   :  { %1115 = sst [smem:[#allocation13_spill]] %s1109_s2 }
   0x3   :  { %9 = vsyncpa [#allocation4], 0 }
   0x4   :  { %11 = vsyncpa [#allocation4 + $0x1], 0 }
   0x5   :  { %12 = vsyncpa [#allocation7], 0 }
   0x6   :  { %14 = vsyncpa [#allocation7 + $0x1], 0 }
   0x7   :  { %15 = vsyncpa [#allocation5], 0 }
   0x8   :  { %17 = vsyncpa [#allocation5 + $0x1], 0  ;;  %s855_s15 = smov 0   ;;  %s857_s16 = smov 0  }
   0x9   :  { %s859_s17 = smov 0   ;;  %s861_s18 = smov 0  }
   0xa   :  { %s863_s19 = smov 0   ;;  %s865_s20 = smov 0  }
   0xb LB: > { %s584_s21 = sadd.s32 4294967295, %s818_s20   ;;  %s585_s22 = sadd.s32 4294967294, %s818_s20   ;;  %s818_s20 = sphi %s865_s20, %s23_s20   ;;  %s814_s19 = sphi %s863_s19, %s1129_s19   ;;  %s810_s18 = sphi %s861_s18, %s1128_s18   ;;  %s806_s17 = sphi %s859_s17, %s1127_s17   ;;  %s802_s16 = sphi %s857_s16, %s1126_s16   ;;  %s798_s15 = sphi %s855_s15, %s1125_s15  }
   0xc   : > { %s32_s23 = sadd.s32 1, %s814_s19  ;;  %s70_s24 = sadd.s32 1, %s806_s17 }
   0xd   : > { %p33_p0 = scmp.ge.s32.totalorder %s32_s23, 2  ;;  %p77_p1 = scmp.ne.s32.totalorder %s806_s17, %s802_s16 }
   0xe   : > { %p78_p2 = scmp.eq.s32.totalorder %s818_s20, 0  ;;  %p111_p3 = scmp.ne.s32.totalorder %s802_s16, %s798_s15 }
   0xf   : > { %s1131_s23 = smov (%p33_p0, %s32_s23), 0  ;;  %p112_p5 = scmp.eq.s32.totalorder %s584_s21, 0 }
  0x10   : > { %p896_p4 = por %p78_p2, %p77_p1  ;;  %s66_s26 = ssub.s32 %s814_s19, %s1131_s23 }
  0x11   : > { %p165_p6 = scmp.eq.s32.totalorder %s584_s21, 1  ;;  %p68_p7 = scmp.eq.s32.totalorder %s66_s26, 0 }
  0x12   : > { %p902_p8 = por %p112_p5, %p111_p3  ;;  %p171_p10 = scmp.eq.s32.totalorder %s585_s22, 1 }
  0x13   : > { %p906_p9 = por %p165_p6, %p77_p1  ;;  %p1112_p12 = scmp.ge.s32.totalorder %s818_s20, 2 }
  0x14   : > { %s911_s29 = scalar_select %p68_p7, %s806_s17, %s70_s24  }
  0x15   : > { %s1118_s28 = scalar_select %p906_p9, 1, 0 }
  0x16   : > { %p913_p11 = por %p171_p10, %p111_p3  ;;  %196 = sbr.rel (%p1112_p12) target bundleno = 94 (0x5e), region = 20 }
  0x18   : > { %s1119_s30 = scalar_select %p913_p11, 1, 0 }
  0x1d   : > { %199 = sbr.rel (!%p896_p4) target bundleno = 40 (0x28), region = 24  ;;  %s201_s5 = sand.u32 (%p896_p4), 1, %s806_s17  }
  0x1e   : > { %s590_s6 = sshll.u32 (%p896_p4), %s814_s19, 3  ;;  %s589_s7 = sshll.u32 (%p896_p4), %s201_s5, 4 }
  0x1f   : > { %s1120_s1 = sld [smem:[#allocation12_spill]] (%p896_p4)  ;;  %s203_s11 = scalar_lea.vmem (%p896_p4), [#allocation2], %s589_s7 }
  0x25   : > { %s208_s10 = scalar_lea.vmem %s1120_s1, %s590_s6 }
  0x26   : > { %v238_v0 = vld [vmem:[%s208_s10] sm:$0xff]  ;;  %v240_v1 = vld [vmem:[%s208_s10 + $0x10] sm:$0xff] }
  0x27   : > { %239 = vst [vmem:[%s203_s11] sm:$0xff] %v238_v0  ;;  %241 = vst [vmem:[%s203_s11 + $0x8] sm:$0xff] %v240_v1 }
  0x28 PF: > { %s928_s12 = sand.u32 1, %s806_s17   ;;  %s592_s13 = sshll.u32 %s814_s19, 7 }
  0x29   : > { %s591_s14 = sshll.u32 %s928_s12, 4  ;;  %s1121_s2 = sld [smem:[#allocation13_spill]] }
  0x2a   : > { %s252_s26 = scalar_lea.vmem [#allocation3], %s591_s14  ;;  %s249_s6 = scalar_lea.sflag [#allocation4], %s928_s12 }
  0x2b   : > { %s261_s5 = sshll.u32 %s252_s26, 4  ;;  %s941_s5 = int_to_ptr.vmem [resolvable:$true] %s261_s5 }
  0x2f   : > { %s937_s24 = scalar_lea.hbm %s1121_s2, %s592_s13  ;;  %s680_s10 = scalar_lea.hbm %s1121_s2, 512 }
  0x30   : > { %s676_s7 = scalar_lea.hbm %s937_s24, 256  ;;  %p681_p2 = scmp.lt.u32.totalorder %s937_s24, %s1121_s2 }
  0x31   : > { %p677_p13 = scmp.ne.s32.totalorder %s937_s24, %s676_s7  ;;  %p682_p3 = scmp.lt.u32.totalorder %s680_s10, %s676_s7 }
  0x32   : > { %p684_p6 = scmp.lt.u32.totalorder %s676_s7, %s937_s24 }
  0x33   : > { %p678_p0 = pnand %p677_p13, %p896_p4  ;;  %p683_p5 = por %p682_p3, %p681_p2 }
  0x35   : > { %p679_p1 = pneg %p678_p0  ;;  %p685_p7 = por %p684_p6, %p683_p5 }
  0x37   : > { %p686_p10 = pnand %p685_p7, %p679_p1 }
  0x39   : > { %689 = shalt.err (!%p686_p10)
}
  0x3a   : > { %s690_s22 = scalar_lea.vmem %s941_s5, 256  ;;  %s820_s26 = smov [#allocation3]  }
  0x3b   : > { %p691_p13 = scmp.ne.s32.totalorder %s941_s5, %s690_s22  ;;  %s694_s8 = sshll.u32 %s820_s26, 4  ;;  %s695_s8 = int_to_ptr.vmem [resolvable:$false] %s694_s8 }
  0x3c   : > { %s696_s9 = scalar_lea.vmem %s695_s8, 512  ;;  %p697_p11 = scmp.lt.s32.totalorder %s941_s5, %s695_s8 }
  0x3d   : > { %p692_p0 = pnand %p691_p13, %p896_p4  ;;  %p698_p9 = scmp.lt.s32.totalorder %s696_s9, %s690_s22 }
  0x3f   : > { %p693_p12 = pneg %p692_p0  ;;  %p699_p2 = por %p698_p9, %p697_p11 }
  0x41   : > { %p700_p3 = pnand %p699_p2, %p693_p12 }
  0x43   : > { %703 = shalt.err (!%p700_p3)
}
  0x44   : > { %s821_s7 = smov 256   ;;  %s822_s10 = smov 128  }
  0x45   : > { %s823_s11 = smov 8   ;;  %s975_s26 = scalar_lea.hbm %s1110_s3, %s592_s13 }
  0x46   : > { %608 = dma.hbm_to_vmem [thread:$0]  (%p896_p4), %s937_s24, 256, %s941_s5, %s249_s6, %s821_s7, %s822_s10, %s823_s11  }
  0x47   : > { %s275_s8 = scalar_lea.vmem [#allocation6], %s591_s14  ;;  %s272_s1 = scalar_lea.sflag [#allocation7], %s928_s12 }
  0x48   : > { %s284_s9 = sshll.u32 %s275_s8, 4  ;;  %s704_s2 = scalar_lea.hbm %s975_s26, 256  ;;  %s979_s9 = int_to_ptr.vmem [resolvable:$true] %s284_s9 }
  0x49   : > { %p705_p9 = scmp.ne.s32.totalorder %s975_s26, %s704_s2  ;;  %s708_s13 = scalar_lea.hbm %s1110_s3, 512 }
  0x4a   : > { %p709_p1 = scmp.lt.u32.totalorder %s975_s26, %s1110_s3  ;;  %p710_p5 = scmp.lt.u32.totalorder %s708_s13, %s704_s2 }
  0x4b   : > { %p706_p11 = pnand %p705_p9, %p896_p4  ;;  %p712_p7 = scmp.lt.u32.totalorder %s704_s2, %s975_s26 }
  0x4c   : > { %p711_p6 = por %p710_p5, %p709_p1 }
  0x4d   : > { %p707_p12 = pneg %p706_p11 }
  0x4e   : > { %p713_p10 = por %p712_p7, %p711_p6 }
  0x50   : > { %p714_p13 = pnand %p713_p10, %p707_p12 }
  0x52   : > { %717 = shalt.err (!%p714_p13)
}
  0x53   : > { %s718_s14 = scalar_lea.vmem %s979_s9, 256  ;;  %s824_s22 = smov [#allocation6]  }
  0x54   : > { %p719_p0 = scmp.ne.s32.totalorder %s979_s9, %s718_s14  ;;  %s722_s8 = sshll.u32 %s824_s22, 4  ;;  %s723_s8 = int_to_ptr.vmem [resolvable:$false] %s722_s8 }
  0x55   : > { %s724_s24 = scalar_lea.vmem %s723_s8, 512  ;;  %p725_p9 = scmp.lt.s32.totalorder %s979_s9, %s723_s8 }
  0x56   : > { %p720_p2 = pnand %p719_p0, %p896_p4  ;;  %p726_p11 = scmp.lt.s32.totalorder %s724_s24, %s718_s14 }
  0x58   : > { %p721_p3 = pneg %p720_p2  ;;  %p727_p1 = por %p726_p11, %p725_p9 }
  0x5a   : > { %p728_p5 = pnand %p727_p1, %p721_p3 }
  0x5c   : > { %731 = shalt.err (!%p728_p5)
}
  0x5d   : > { %609 = dma.hbm_to_vmem [thread:$0]  (%p896_p4), %s975_s26, 256, %s979_s9, %s272_s1, %s821_s7, %s822_s10, %s823_s11  }
  0x5e PF: > { %p595_p12 = scmp.ge.s32.totalorder %s818_s20, 1  ;;  %p292_p6 = scmp.lt.s32.totalorder %s818_s20, 3 }
  0x60   : > { %p293_p7 = pnand %p595_p12, %p292_p6 }
  0x61   : > { %s1011_s2 = sand.u32 (!%p293_p7), 1, %s802_s16  }
  0x62   : > { %296 = sbr.rel (%p293_p7) target bundleno = 266 (0x10a), region = 70  ;;  %s1014_s25 = sshll.u32 (!%p293_p7), %s1011_s2, 4 }
  0x63   : > { %s301_s12 = scalar_lea.vmem (!%p293_p7), [#allocation2], %s1014_s25  ;;  %s306_s5 = scalar_lea.sflag (!%p293_p7), [#allocation4], %s1011_s2 }
  0x64   : > { %s309_s1 = scalar_lea.vmem (!%p293_p7), [#allocation3], %s1014_s25 }
  0x69   : > { %785 = dma.done.wait (%p902_p8), %s306_s5, 256  }
  0x6a   : > { %787 = vsyncadd (%p902_p8), %s306_s5, 4294967040  ;;  %s315_s7 = scalar_lea.sflag [#allocation7], %s1011_s2  ;;  %s318_s10 = scalar_lea.vmem [#allocation6], %s1014_s25 }
  0x6b   : > { %789 = dma.done.wait (%p902_p8), %s315_s7, 256  }
  0x6c   : > { %791 = vsyncadd (%p902_p8), %s315_s7, 4294967040  ;;  %v825_v2 = vmov 0   ;;  %v600_v3 = vld [vmem:[%s1107_s0 + $0x10] sm:$0xff]  ;;  %v367_v4 = vld [vmem:[%s1107_s0] sm:$0xff]  ;;  %s356_s7 = scalar_lea.vmem [#allocation8], %s1014_s25  ;;  %s605_s26 = sshll.u32 %s810_s18, 7 }
  0x6d   : > { %675 = vset.pattern.permute.xlu1 %v825_v2  ;;  %674 = vset.pattern.permute.xlu0 %v825_v2  ;;  %v601_v5 = vld [vmem:[%s1107_s0 + $0x18] sm:$0xff]  ;;  %v368_v6 = vld [vmem:[%s1107_s0 + $0x8] sm:$0xff]  ;;  %v602_v8 = vld [vmem:[%s1107_s0 + $0x20] sm:$0xff]  ;;  %s439_s11 = sshll.u32 %s356_s7, 4  ;;  %s1058_s9 = scalar_lea.hbm %s1111_s4, %s605_s26  ;;  %s1053_s11 = int_to_ptr.vmem [resolvable:$true] %s439_s11 }
  0x6e   : > { %390 = vperm.xlu1 %675, %v600_v3   ;;  %373 = vperm.xlu0 %674, %v367_v4   ;;  %v603_v7 = vld [vmem:[%s1107_s0 + $0x28] sm:$0xff]  ;;  %v386_v11 = vld [vmem:[%s309_s1] sm:$0xff]  ;;  %s424_s18 = scalar_lea.sflag [#allocation5], %s1011_s2  ;;  %s732_s25 = scalar_lea.vmem %s1053_s11, 256 }
  0x6f   : > { %v369_v12 = vld [vmem:[%s301_s12] sm:$0xff]  ;;  %v387_v13 = vld [vmem:[%s309_s1 + $0x8] sm:$0xff]  ;;  %p733_p4 = scmp.ne.s32.totalorder %s1053_s11, %s732_s25  ;;  %p1122_p8 = scmp.ne.s32.totalorder %s1118_s28, 0 }
  0x70   : > { %v370_v14 = vld [vmem:[%s301_s12 + $0x8] sm:$0xff]  ;;  %v405_v22 = vld [vmem:[%s318_s10] sm:$0xff] }
  0x71   : > { %v406_v21 = vld [vmem:[%s318_s10 + $0x8] sm:$0xff]  ;;  %p734_p10 = pnand %p733_p4, %p1122_p8  ;;  %s826_s10 = smov [#allocation8]  }
  0x72   : > { %395 = vperm.xlu1 %675, %v601_v5   ;;  %378 = vperm.xlu0 %674, %v368_v6   ;;  %s736_s13 = sshll.u32 %s826_s10, 4  ;;  %s737_s13 = int_to_ptr.vmem [resolvable:$false] %s736_s13 }
  0x73   : > { %p735_p13 = pneg %p734_p10  ;;  %s738_s6 = scalar_lea.vmem %s737_s13, 512 }
  0x74   : > { %p739_p0 = scmp.lt.s32.totalorder %s1053_s11, %s737_s13  ;;  %p740_p2 = scmp.lt.s32.totalorder %s738_s6, %s732_s25 }
  0x76   : > { %414 = vperm.xlu1 %675, %v603_v7   ;;  %409 = vperm.xlu0 %674, %v602_v8   ;;  %p741_p3 = por %p740_p2, %p739_p0 }
  0x78   : > { %p742_p9 = pnand %p741_p3, %p735_p13 }
  0xed   : > { %v391_v9 = vpop.permute.xlu1 %390  ;;  %v374_v10 = vpop.permute.xlu0 %373 }
  0xee   : > { %v398_v17 = vmul.f32 %v391_v9, %v386_v11  ;;  %v381_v18 = vmul.f32 %v374_v10, %v369_v12 }
  0xf0   : > { %v400_v25 = vadd.f32 %v398_v17, %v381_v18 }
  0xf1   : > { %v396_v15 = vpop.permute.xlu1 %395  ;;  %v379_v16 = vpop.permute.xlu0 %378 }
  0xf2   : > { %v399_v19 = vmul.f32 %v396_v15, %v387_v13  ;;  %v382_v20 = vmul.f32 %v379_v16, %v370_v14 }
  0xf4   : > { %v401_v26 = vadd.f32 %v399_v19, %v382_v20 }
  0xf5   : > { %v415_v23 = vpop.permute.xlu1 %414  ;;  %v410_v24 = vpop.permute.xlu0 %409 }
  0xf6   : > { %v418_v27 = vmul.f32 %v415_v23, %v406_v21  ;;  %v417_v28 = vmul.f32 %v410_v24, %v405_v22 }
  0xf8   : > { %v420_v29 = vadd.f32 %v418_v27, %v401_v26  ;;  %v419_v30 = vadd.f32 %v417_v28, %v400_v25 }
  0xfa   : > { %422 = vst [vmem:[%s356_s7 + $0x8] sm:$0xff] %v420_v29  ;;  %421 = vst [vmem:[%s356_s7] sm:$0xff] %v419_v30 }
  0xfb   : > { %745 = shalt.err (!%p742_p9)
}
  0xfc   : > { %s746_s21 = scalar_lea.hbm %s1058_s9, 256  ;;  %s750_s22 = scalar_lea.hbm %s1111_s4, 512 }
  0xfd   : > { %p747_p11 = scmp.ne.s32.totalorder %s1058_s9, %s746_s21  ;;  %p751_p12 = scmp.lt.u32.totalorder %s1058_s9, %s1111_s4 }
  0xfe   : > { %p752_p6 = scmp.lt.u32.totalorder %s750_s22, %s746_s21  ;;  %p754_p4 = scmp.lt.u32.totalorder %s746_s21, %s1058_s9 }
  0xff   : > { %p748_p1 = pnand %p747_p11, %p1122_p8 }
 0x100   : > { %p753_p7 = por %p752_p6, %p751_p12 }
 0x101   : > { %p749_p5 = pneg %p748_p1 }
 0x102   : > { %p755_p10 = por %p754_p4, %p753_p7 }
 0x104   : > { %p756_p13 = pnand %p755_p10, %p749_p5 }
 0x106   : > { %759 = shalt.err (!%p756_p13)
}
 0x107   : > { %s827_s5 = smov 128   ;;  %s828_s7 = smov 256  }
 0x108   : > { %s829_s26 = smov 8  }
 0x109   : > { %612 = dma.vmem_to_hbm [thread:$0]  (%p1122_p8), %s1053_s11, 256, %s1058_s9, %s424_s18, %s827_s5, %s828_s7, %s829_s26  }
 0x10a PF: > { %s454_s12 = sand.u32 1, %s798_s15   ;;  %p1123_p0 = scmp.ne.s32.totalorder %s1119_s30, 0 }
 0x10b   : > { %p1124_p2 = scmp.ge.s32.totalorder %s818_s20, 2  ;;  %s455_s1 = scalar_lea.sflag [#allocation5], %s454_s12 }
 0x10d   : > { %p615_p3 = pnand %p1124_p2, %p1123_p0 }
 0x10f   : > { %793 = dma.done.wait (!%p615_p3), %s455_s1, 256  }
 0x110   : > { %795 = vsyncadd (!%p615_p3), %s455_s1, 4294967040  ;;  %s23_s20 = sadd.s32 1, %s818_s20   ;;  %s1125_s15 = smov %s802_s16 }
 0x111   : > { %p20_p9 = scmp.ge.s32.totalorder %s23_s20, 4   ;;  %s1126_s16 = smov %s806_s17 }
 0x112   : > { %s1127_s17 = smov %s911_s29  ;;  %s1128_s18 = smov %s814_s19 }
 0x113   : > { %s1129_s19 = smov %s1131_s23  ;;  %22 = sbr.rel (!%p20_p9) target bundleno = 11 (0xb), region = 145 }
 0x11a   :  { %460 = vsyncpa [#allocation4], 1 }
 0x11b   :  { %462 = vsyncpa [#allocation4 + $0x1], 1 }
 0x11c   :  { %463 = vsyncpa [#allocation7], 1 }
 0x11d   :  { %465 = vsyncpa [#allocation7 + $0x1], 1 }
 0x11e   :  { %466 = vsyncpa [#allocation5], 1 }
 0x11f   :  { %468 = vsyncpa [#allocation5 + $0x1], 1 }

</bundles_post_ra>
